<compile_context>
chip_gen: v6e
topology: v6e:2x2x1
jax: 0.10.0
libtpu: 0.0.40
codegen_flags: <defaults>
</compile_context>

<pallas_src>
import jax
import jax.numpy as jnp
from jax.experimental import pallas as pl
from jax.experimental.pallas import tpu as pltpu


def _round_up(x, n):
    return ((x + n - 1) // n) * n


def _tpu_traits():
    """(is_v7x, has_bf16_valu) — conservative fallback if detection fails."""
    kind = ""
    try:
        dev = jax.devices()[0]
        if dev.platform == "tpu":
            kind = dev.device_kind.lower()
    except Exception:
        pass
    compact = kind.replace(" ", "")
    is_v7 = ("v7" in compact) or ("tpu7" in compact)
    has_bf16_valu = is_v7 or ("v6" in compact)
    return is_v7, has_bf16_valu


def _choose_tm(m, tm, n_tc):
    """Row-tile size: big by default, lane-aligned when tiled, and (on v7x)
    arranged so the parallel grid axis feeds both TensorCores."""
    m8 = _round_up(m, 8)
    if tm is None:
        tm = 2048
    tm = min(max(int(tm), 8), 4096)
    if m8 <= tm:
        # Whole problem fits in one tile.
        if n_tc > 1 and m8 > 2 * 128:
            # Split across the 2 TensorCores (v7x) when there is enough work.
            return _round_up(pl.cdiv(m8, n_tc), 128)
        return m8
    tm = _round_up(tm, 128)
    if n_tc > 1:
        nt = pl.cdiv(m8, tm)
        if nt % n_tc:
            alt = _round_up(pl.cdiv(m8, nt + (n_tc - nt % n_tc)), 128)
            if pl.cdiv(m8, alt) % n_tc == 0:
                tm = alt
    return tm


def _make_critic_kernel(relu_dtype):
    relu_dtype = jnp.dtype(relu_dtype)

    def kernel(sT_ref, aT_ref, w0_ref, w1a_ref, w1b_ref, wo_ref, bo_ref,
               out_ref):
        cdt = w1a_ref.dtype
        # Layer 0 (bias folded into W0 via the ones-row of sT):  (H0, TM) f32
        hT = jnp.dot(w0_ref[...], sT_ref[...],
                     preferred_element_type=jnp.float32)
        hT = jnp.maximum(hT.astype(relu_dtype), 0).astype(cdt)
        # Layer 1 over cat([h, action]) in split-weight form; b1 folded into
        # W1b via the ones-row of aT.                            (H1, TM) f32
        xT = (jnp.dot(w1a_ref[...], hT, preferred_element_type=jnp.float32)
              + jnp.dot(w1b_ref[...], aT_ref[...],
                        preferred_element_type=jnp.float32))
        xT = jnp.maximum(xT.astype(relu_dtype), 0).astype(cdt)
        # Width-1 output layer on the MXU: (1, H1) @ (H1, TM) -> (1, TM).
        q = jnp.dot(wo_ref[...], xT, preferred_element_type=jnp.float32)
        out_ref[...] = q + bo_ref[...]

    return kernel


def critic_forward(state, action, params, *, tm=None,
                   matmul_dtype=jnp.bfloat16):
    """state:  [n, num_agents, state_size*num_agents]  f32
       action: [n, num_agents, action_size*num_agents] f32
       returns Q values: [n, num_agents, 1] f32

    NOTE: for best end-to-end perf call this under jax.jit so the wrapper-side
    pad / transpose / ones-append / cast fuse into a single XLA pass."""
    n, num_agents, sn = state.shape
    _, _, an = action.shape
    m = n * num_agents

    w0, b0, w1, b1, wo, bo = params
    h0 = w0.shape[0]
    h1 = w1.shape[0]
    sn1 = sn + 1            # +1 for the folded b0 column / ones row
    an1 = an + 1            # +1 for the folded b1 column / ones row

    is_v7, has_bf16_valu = _tpu_traits()
    n_tc = 2 if is_v7 else 1

    tm = _choose_tm(m, tm, n_tc)
    num_tiles = pl.cdiv(m, tm)
    m_pad = num_tiles * tm

    # ---- activations: flatten to rows, append ones row (bias fold), pad to
    #      the tile grid, go feature-major ([feat, rows]) -----------------
    s2 = jnp.concatenate(
        [state.reshape(m, sn), jnp.ones((m, 1), state.dtype)], axis=1)
    a2 = jnp.concatenate(
        [action.reshape(m, an), jnp.ones((m, 1), action.dtype)], axis=1)
    if m_pad != m:
        s2 = jnp.pad(s2, ((0, m_pad - m), (0, 0)))
        a2 = jnp.pad(a2, ((0, m_pad - m), (0, 0)))
    sT = s2.T.astype(matmul_dtype)            # (sn+1, m_pad)
    aT = a2.T.astype(matmul_dtype)            # (an+1, m_pad)

    # ---- weights: fold biases, split W1 for the fused concat ------------
    w1a = w1[:, :h0]
    w1b = w1[:, h0:]
    w0_aug = jnp.concatenate([w0, b0.reshape(h0, 1)], axis=1).astype(matmul_dtype)
    w1a_c = w1a.astype(matmul_dtype)
    w1b_aug = jnp.concatenate([w1b, b1.reshape(h1, 1)], axis=1).astype(matmul_dtype)
    wo_row = wo.reshape(1, h1).astype(matmul_dtype)
    bo_c = bo.reshape(1, 1).astype(jnp.float32)

    in_bytes = jnp.dtype(matmul_dtype).itemsize
    flops = 2 * m_pad * (sn1 * h0 + h0 * h1 + an1 * h1 + h1)
    bytes_accessed = (
        (sT.size + aT.size + w0_aug.size + w1a_c.size + w1b_aug.size
         + wo_row.size) * in_bytes + bo_c.size * 4 + m_pad * 4)
    cost = pl.CostEstimate(flops=int(flops), transcendentals=0,
                           bytes_accessed=int(bytes_accessed))

    # ---- VMEM budget -----------------------------------------------------
    def lane_pad(x):
        return max(_round_up(x, 128), 128)

    w_bytes = ((h0 * lane_pad(sn1) + h1 * lane_pad(h0) + h1 * lane_pad(an1)
                + lane_pad(h1)) * in_bytes + 128 * 4)
    act_bytes = 2 * (sn1 + an1) * tm * in_bytes + 2 * tm * 4   # double-buffered
    inter_bytes = (h0 + h1) * tm * (4 + in_bytes)              # f32 + low-prec hT/xT
    vmem_est = 2 * w_bytes + act_bytes + inter_bytes
    vmem_cap = (48 << 20) if is_v7 else (64 << 20)             # headroom under 64 MiB on v7x
    vmem_limit = int(min(vmem_cap, max(2 * vmem_est, 32 << 20)))

    relu_dtype = matmul_dtype if has_bf16_valu else jnp.float32
    kernel = _make_critic_kernel(relu_dtype)

    in_specs = [
        pl.BlockSpec((sn1, tm), lambda i: (0, i)),   # sT   (pipelined per tile)
        pl.BlockSpec((an1, tm), lambda i: (0, i)),   # aT   (pipelined per tile)
        pl.BlockSpec((h0, sn1), lambda i: (0, 0)),   # W0|b0   (resident)
        pl.BlockSpec((h1, h0), lambda i: (0, 0)),    # W1a     (resident)
        pl.BlockSpec((h1, an1), lambda i: (0, 0)),   # W1b|b1  (resident)
        pl.BlockSpec((1, h1), lambda i: (0, 0)),     # W_out row (lane-dense)
        pl.BlockSpec((1, 1), lambda i: (0, 0)),      # b_out
    ]
    out_spec = pl.BlockSpec((1, tm), lambda i: (0, i))   # lane-dense q row

    out = pl.pallas_call(
        kernel,
        out_shape=jax.ShapeDtypeStruct((1, m_pad), jnp.float32),
        grid=(num_tiles,),
        in_specs=in_specs,
        out_specs=out_spec,
        compiler_params=pltpu.CompilerParams(
            dimension_semantics=("parallel",),
            vmem_limit_bytes=vmem_limit),
        cost_estimate=cost,
    )(sT, aT, w0_aug, w1a_c, w1b_aug, wo_row, bo_c)

    return out[0, :m].reshape(n, num_agents, 1)


def init_critic_params(key, state_size, action_size, num_agents,
                       hidden_layers=(512, 256)):
    """nn.Linear-style init: U(-1/sqrt(fan_in), 1/sqrt(fan_in)).
       Returns natural-orientation params (w0, b0, w1, b1, wo, bo)."""
    sn = state_size * num_agents
    an = action_size * num_agents
    h0, h1 = hidden_layers  # kernel fuses the default 2-hidden-layer topology

    def linear(key, fan_in, fan_out):
        kw, kb = jax.random.split(key)
        bound = 1.0 / jnp.sqrt(jnp.float32(fan_in))
        w = jax.random.uniform(kw, (fan_out, fan_in), jnp.float32, -bound, bound)
        b = jax.random.uniform(kb, (fan_out,), jnp.float32, -bound, bound)
        return w, b

    k0, k1, k2 = jax.random.split(key, 3)
    w0, b0 = linear(k0, sn, h0)            # Linear(sn -> h0)
    w1, b1 = linear(k1, h0 + an, h1)       # Linear(h0 + an -> h1)
    wo, bo = linear(k2, h1, 1)             # Linear(h1 -> 1)
    return (w0, b0, w1, b1, wo, bo)


def critic_reference(state, action, params):
    """Plain-JAX reference identical to the PyTorch forward."""
    w0, b0, w1, b1, wo, bo = params
    h = jax.nn.relu(state @ w0.T + b0)                # [n, A, H0]
    x = jnp.concatenate([h, action], axis=2)          # [n, A, H0+AN]
    x = jax.nn.relu(x @ w1.T + b1)                    # [n, A, H1]
    return x @ wo.T + bo                              # [n, A, 1]


if __name__ == "__main__":
    key = jax.random.PRNGKey(0)
    kp, ks, ka, kp2, ks2, ka2 = jax.random.split(key, 6)

    # --- Small config ---------------------------------------------------------
    batch, num_agents = 2, 2
    state_size, action_size = 8, 4
    hidden_layers = (64, 32)

    params = init_critic_params(kp, state_size, action_size, num_agents,
                                hidden_layers=hidden_layers)
    state = jax.random.normal(
        ks, (batch, num_agents, state_size * num_agents), jnp.float32)
    action = jax.random.normal(
        ka, (batch, num_agents, action_size * num_agents), jnp.float32)

    q_ref = critic_reference(state, action, params)

    # f32 matmul path (tighter check).
    q_f32 = jax.block_until_ready(
        critic_forward(state, action, params, matmul_dtype=jnp.float32))
    assert q_f32.shape == (batch, num_agents, 1)
    assert jnp.allclose(q_f32, q_ref, atol=5e-3, rtol=5e-3), (q_f32, q_ref)

    # bf16 matmul path (default; f32 accumulation, looser tolerance).
    q_bf16 = jax.block_until_ready(critic_forward(state, action, params))
    assert q_bf16.shape == (batch, num_agents, 1)
    assert jnp.allclose(q_bf16, q_ref, atol=3e-2, rtol=3e-2), (q_bf16, q_ref)

    # --- Larger config: default hiddens, default TM (1-2 tiles) ---------------
    batch2, num_agents2 = 300, 2          # m = 600 rows
    state_size2, action_size2 = 8, 4
    params2 = init_critic_params(kp2, state_size2, action_size2, num_agents2)
    state2 = jax.random.normal(
        ks2, (batch2, num_agents2, state_size2 * num_agents2), jnp.float32)
    action2 = jax.random.normal(
        ka2, (batch2, num_agents2, action_size2 * num_agents2), jnp.float32)

    q2 = jax.block_until_ready(critic_forward(state2, action2, params2))
    q2_ref = critic_reference(state2, action2, params2)
    assert q2.shape == (batch2, num_agents2, 1)
    assert jnp.allclose(q2, q2_ref, atol=5e-2, rtol=5e-2), (
        float(jnp.max(jnp.abs(q2 - q2_ref))))

    # --- Same config, forced small TM: exercises multi-tile grid + row padding
    q3 = jax.block_until_ready(
        critic_forward(state2, action2, params2, tm=256))
    assert q3.shape == (batch2, num_agents2, 1)
    assert jnp.allclose(q3, q2_ref, atol=5e-2, rtol=5e-2), (
        float(jnp.max(jnp.abs(q3 - q2_ref))))

    print("KERNEL_OK")
</pallas_src>

<mosaic_0001>
module attributes {stable_mosaic.version = 11 : i64} {
  func.func @kernel(%arg0: i32, %arg1: memref<17x8xf32, #tpu.memory_space<vmem>>, %arg2: memref<9x8xf32, #tpu.memory_space<vmem>>, %arg3: memref<64x17xf32, #tpu.memory_space<vmem>>, %arg4: memref<32x64xf32, #tpu.memory_space<vmem>>, %arg5: memref<32x9xf32, #tpu.memory_space<vmem>>, %arg6: memref<1x32xf32, #tpu.memory_space<vmem>>, %arg7: memref<1x1xf32, #tpu.memory_space<vmem>>, %arg8: memref<1x8xf32, #tpu.memory_space<vmem>>) attributes {dimension_semantics = [#tpu.dimension_semantics<parallel>], iteration_bounds = array<i64: 1>, scalar_prefetch = 0 : i64, scratch_operands = 0 : i64, tpu.core_type = #tpu.core_type<tc>, window_params = [{transform_indices = @transform_0, window_bounds = array<i64: 17, 8>}, {transform_indices = @transform_1, window_bounds = array<i64: 9, 8>}, {pipeline_mode = #tpu.pipeline_mode<synchronous>, transform_indices = @transform_2, window_bounds = array<i64: 64, 17>}, {pipeline_mode = #tpu.pipeline_mode<synchronous>, transform_indices = @transform_3, window_bounds = array<i64: 32, 64>}, {pipeline_mode = #tpu.pipeline_mode<synchronous>, transform_indices = @transform_4, window_bounds = array<i64: 32, 9>}, {pipeline_mode = #tpu.pipeline_mode<synchronous>, transform_indices = @transform_5, window_bounds = array<i64: 1, 32>}, {pipeline_mode = #tpu.pipeline_mode<synchronous>, transform_indices = @transform_6, window_bounds = array<i64: 1, 1>}, {transform_indices = @transform_7, window_bounds = array<i64: 1, 8>}]} {
    %c0 = arith.constant 0 : index
    %c0_0 = arith.constant 0 : index
    %0 = vector.load %arg3[%c0, %c0_0] : memref<64x17xf32, #tpu.memory_space<vmem>>, vector<64x17xf32>
    %c0_1 = arith.constant 0 : index
    %c0_2 = arith.constant 0 : index
    %1 = vector.load %arg1[%c0_1, %c0_2] : memref<17x8xf32, #tpu.memory_space<vmem>>, vector<17x8xf32>
    %cst = arith.constant dense<0.000000e+00> : vector<64x8xf32>
    %2 = tpu.matmul %0, %1, %cst {dimension_numbers = #tpu.dot_dimension_numbers<[1], [0], [0], [1], [0, 0, 1, 1], [], []>} : vector<64x17xf32>, vector<17x8xf32>, vector<64x8xf32> -> vector<64x8xf32>
    %cst_3 = arith.constant 0.000000e+00 : f32
    %3 = vector.broadcast %cst_3 : f32 to vector<64x8xf32>
    %4 = arith.maximumf %2, %3 : vector<64x8xf32>
    %c0_4 = arith.constant 0 : index
    %c0_5 = arith.constant 0 : index
    %5 = vector.load %arg4[%c0_4, %c0_5] : memref<32x64xf32, #tpu.memory_space<vmem>>, vector<32x64xf32>
    %cst_6 = arith.constant dense<0.000000e+00> : vector<32x8xf32>
    %6 = tpu.matmul %5, %4, %cst_6 {dimension_numbers = #tpu.dot_dimension_numbers<[1], [0], [0], [1], [0, 0, 1, 1], [], []>} : vector<32x64xf32>, vector<64x8xf32>, vector<32x8xf32> -> vector<32x8xf32>
    %c0_7 = arith.constant 0 : index
    %c0_8 = arith.constant 0 : index
    %7 = vector.load %arg5[%c0_7, %c0_8] : memref<32x9xf32, #tpu.memory_space<vmem>>, vector<32x9xf32>
    %c0_9 = arith.constant 0 : index
    %c0_10 = arith.constant 0 : index
    %8 = vector.load %arg2[%c0_9, %c0_10] : memref<9x8xf32, #tpu.memory_space<vmem>>, vector<9x8xf32>
    %cst_11 = arith.constant dense<0.000000e+00> : vector<32x8xf32>
    %9 = tpu.matmul %7, %8, %cst_11 {dimension_numbers = #tpu.dot_dimension_numbers<[1], [0], [0], [1], [0, 0, 1, 1], [], []>} : vector<32x9xf32>, vector<9x8xf32>, vector<32x8xf32> -> vector<32x8xf32>
    %10 = arith.addf %6, %9 : vector<32x8xf32>
    %cst_12 = arith.constant 0.000000e+00 : f32
    %11 = vector.broadcast %cst_12 : f32 to vector<32x8xf32>
    %12 = arith.maximumf %10, %11 : vector<32x8xf32>
    %c0_13 = arith.constant 0 : index
    %c0_14 = arith.constant 0 : index
    %13 = vector.load %arg6[%c0_13, %c0_14] : memref<1x32xf32, #tpu.memory_space<vmem>>, vector<1x32xf32>
    %cst_15 = arith.constant dense<0.000000e+00> : vector<1x8xf32>
    %14 = tpu.matmul %13, %12, %cst_15 {dimension_numbers = #tpu.dot_dimension_numbers<[1], [0], [0], [1], [0, 0, 1, 1], [], []>} : vector<1x32xf32>, vector<32x8xf32>, vector<1x8xf32> -> vector<1x8xf32>
    %c0_16 = arith.constant 0 : index
    %c0_17 = arith.constant 0 : index
    %15 = vector.load %arg7[%c0_16, %c0_17] : memref<1x1xf32, #tpu.memory_space<vmem>>, vector<1x1xf32>
    %16 = vector.broadcast %15 : vector<1x1xf32> to vector<1x8xf32>
    %17 = arith.addf %14, %16 : vector<1x8xf32>
    %c0_18 = arith.constant 0 : index
    %c0_19 = arith.constant 0 : index
    %18 = vector.load %arg8[%c0_18, %c0_19] : memref<1x8xf32, #tpu.memory_space<vmem>>, vector<1x8xf32>
    tpu.vector_store %arg8[%c0_18, %c0_19], %17 {strides = array<i32>} : memref<1x8xf32, #tpu.memory_space<vmem>>, vector<1x8xf32>,
    return
  }
  func.func @transform_0(%arg0: i32) -> (i32, i32) {
    %c0_i32 = arith.constant 0 : i32
    %c0_i32_0 = arith.constant 0 : i32
    return %c0_i32, %arg0 : i32, i32
  }
  func.func @transform_1(%arg0: i32) -> (i32, i32) {
    %c0_i32 = arith.constant 0 : i32
    %c0_i32_0 = arith.constant 0 : i32
    return %c0_i32, %arg0 : i32, i32
  }
  func.func @transform_2(%arg0: i32) -> (i32, i32) {
    %c0_i32 = arith.constant 0 : i32
    %c0_i32_0 = arith.constant 0 : i32
    %c0_i32_1 = arith.constant 0 : i32
    return %c0_i32, %c0_i32_0 : i32, i32
  }
  func.func @transform_3(%arg0: i32) -> (i32, i32) {
    %c0_i32 = arith.constant 0 : i32
    %c0_i32_0 = arith.constant 0 : i32
    %c0_i32_1 = arith.constant 0 : i32
    return %c0_i32, %c0_i32_0 : i32, i32
  }
  func.func @transform_4(%arg0: i32) -> (i32, i32) {
    %c0_i32 = arith.constant 0 : i32
    %c0_i32_0 = arith.constant 0 : i32
    %c0_i32_1 = arith.constant 0 : i32
    return %c0_i32, %c0_i32_0 : i32, i32
  }
  func.func @transform_5(%arg0: i32) -> (i32, i32) {
    %c0_i32 = arith.constant 0 : i32
    %c0_i32_0 = arith.constant 0 : i32
    %c0_i32_1 = arith.constant 0 : i32
    return %c0_i32, %c0_i32_0 : i32, i32
  }
  func.func @transform_6(%arg0: i32) -> (i32, i32) {
    %c0_i32 = arith.constant 0 : i32
    %c0_i32_0 = arith.constant 0 : i32
    %c0_i32_1 = arith.constant 0 : i32
    return %c0_i32, %c0_i32_0 : i32, i32
  }
  func.func @transform_7(%arg0: i32) -> (i32, i32) {
    %c0_i32 = arith.constant 0 : i32
    %c0_i32_0 = arith.constant 0 : i32
    return %c0_i32, %arg0 : i32, i32
  }
}

</mosaic_0001>

<bundles_post_ra>
// kernel: tpu_custom_call.1
= control target key start
LH: loop header
LB: loop body
LE: loop exit
PB: predicated region body
PF: predicated region fallthrough
CT: control target
= control target key end

     0   :  { %s769_s0 = inlined_call_operand.vmem [shape: f32[17,8], index: 0, kind: input, shape index: {}]   ;;  %s770_s1 = inlined_call_operand.vmem [shape: f32[9,8], index: 1, kind: input, shape index: {}]   ;;  %s771_s2 = inlined_call_operand.vmem [shape: f32[64,17], index: 2, kind: input, shape index: {}]   ;;  %s772_s3 = inlined_call_operand.vmem [shape: f32[32,64], index: 3, kind: input, shape index: {}]   ;;  %s773_s4 = inlined_call_operand.vmem [shape: f32[32,9], index: 4, kind: input, shape index: {}]   ;;  %s774_s5 = inlined_call_operand.vmem [shape: f32[1,32], index: 5, kind: input, shape index: {}]   ;;  %s775_s6 = inlined_call_operand.<no memory space> [shape: f32[1,1], index: 6, kind: input, shape index: {}]   ;;  %s776_s7 = inlined_call_operand.hbm [shape: f32[1,8], index: 7, kind: output, shape index: {}]  }
   0x1   :  { %v12_v0 = vstv %s775_s6 }
   0x2   :  { %13 = vst [vmem:[#allocation2] sm:$0x1] %v12_v0 }
   0x3   :  { %v39_v1 = vld [vmem:[%s769_s0 + $0x10] sm:$0x1]  ;;  %vm65_vm0 = vcmask 1040384   ;;  %v38_v2 = vld [vmem:[%s769_s0 + $0x8] sm:$0xff]  ;;  %vm40_vm1 = vcmask 138240   ;;  %v29_v3 = vld [vmem:[%s771_s2] sm:$0xff] }
   0x4   :  { %549 = vmatprep.subr.msk.mxu0 %vm65_vm0, %v39_v1  ;;  %v37_v4 = vld [vmem:[%s769_s0] sm:$0xff]  ;;  %555 = vmatprep.mubr.msk.f32.mxu0 %vm40_vm1, %v29_v3 }
   0x5   :  { %550 = vmatpush3.msk.msra.mxu0 %vm65_vm0, %v39_v1 }
   0x6   :  { %551 = vmatprep.subr.mxu0 %v38_v2 }
   0x7   :  { %14 = vsyncpa [#allocation4], 0  ;;  %552 = vmatpush3.msra.mxu0 %v38_v2  ;;  %v30_v5 = vld [vmem:[%s771_s2 + $0x8] sm:$0xff]  ;;  %v31_v6 = vld [vmem:[%s771_s2 + $0x10] sm:$0xff]  ;;  %vm192_vm2 = vcmask 72704   ;;  %vm293_vm3 = vcmask 523264   ;;  %v402_v58 = vlaneseq }
   0x8   :  { %553 = vmatprep.subr.mxu0 %v37_v4  ;;  %v32_v7 = vld [vmem:[%s771_s2 + $0x18] sm:$0xff]  ;;  %v33_v8 = vld [vmem:[%s771_s2 + $0x20] sm:$0xff]  ;;  %v34_v9 = vld [vmem:[%s771_s2 + $0x28] sm:$0xff]  ;;  %v637_v38 = vmov 0.0   ;;  %vm638_vm4 = vmmov 0   ;;  %v639_v40 = vmov 0  }
   0x9   :  { %554 = vmatpush3.msra.mxu0 %v37_v4  ;;  %v35_v10 = vld [vmem:[%s771_s2 + $0x30] sm:$0xff]  ;;  %v36_v11 = vld [vmem:[%s771_s2 + $0x38] sm:$0xff]  ;;  %v191_v12 = vld [vmem:[%s770_s1 + $0x8] sm:$0x1]  ;;  %614 = vset.pattern.permute.xlu0 %v639_v40  ;;  %vm406_vm5 = vcmask 261120   ;;  %v403_v59 = vshrl.u32 %v402_v58, 7 }
   0xa   :  { %556 = vmatmul.mubr.msk.f32.vlgmr.msra.gmra.mxu0 %vm40_vm1, %v30_v5  ;;  %567 = vmatprep.subr.msk.mxu1 %vm65_vm0, %v191_v12  ;;  %v190_v13 = vld [vmem:[%s770_s1] sm:$0xff]  ;;  %v187_v15 = vld [vmem:[%s773_s4 + $0x8] sm:$0xff]  ;;  %v188_v16 = vld [vmem:[%s773_s4 + $0x10] sm:$0xff]  ;;  %s640_s16 = smov [#allocation3]   ;;  %vm480_vm6 = vcmask 57344  }
   0xb   :  { %558 = vmatprep.mubr.msk.f32.mxu0 %vm40_vm1, %v31_v6  ;;  %568 = vmatpush3.msk.msra.mxu1 %vm65_vm0, %v191_v12  ;;  %v186_v14 = vld [vmem:[%s773_s4] sm:$0xff]  ;;  %v189_v17 = vld [vmem:[%s773_s4 + $0x18] sm:$0xff]  ;;  %v183_v35 = vld [vmem:[%s772_s3 + $0x8] sm:$0xff]  ;;  %v404_v60 = vsub.s32 0, %v403_v59  ;;  %s488_s17 = sshll.u32 %s640_s16, 4  ;;  %s489_s17 = int_to_ptr.vmem [resolvable:$true] %s488_s17 }
   0xc   :  { %569 = vmatprep.subr.mxu1 %v190_v13  ;;  %571 = vmatprep.mubr.msk.f32.mxu1 %vm192_vm2, %v186_v14  ;;  %v182_v18 = vld [vmem:[%s772_s3] sm:$0xff]  ;;  %v184_v36 = vld [vmem:[%s772_s3 + $0x10] sm:$0xff]  ;;  %v185_v37 = vld [vmem:[%s772_s3 + $0x18] sm:$0xff]  ;;  %s615_s18 = scalar_lea.vmem %s489_s17, 16  ;;  %p620_p1 = scmp.lt.s32.totalorder %s489_s17, %s489_s17 }
   0xd   :  { %570 = vmatpush3.msra.mxu1 %v190_v13  ;;  %599 = vmatprep.subr.mxu0 %v637_v38  ;;  %v396_v39 = vld [vmem:[#allocation2] sm:$0x1]  ;;  %p616_p0 = scmp.ne.s32.totalorder %s489_s17, %s615_s18 }
   0xe   :  { %559 = vmatmul.mubr.msk.f32.gmra.mxu0 %vm40_vm1, %v32_v7  ;;  %572 = vmatmul.mubr.msk.f32.vlgmr.msra.gmra.mxu1 %vm192_vm2, %v187_v15  ;;  %v395_v57 = vld [vmem:[%s774_s5] sm:$0x1]  ;;  %s619_s5 = scalar_lea.vmem %s489_s17, 32 }
   0xf   :  { %561 = vmatprep.mubr.msk.f32.mxu0 %vm40_vm1, %v33_v8  ;;  %574 = vmatprep.mubr.msk.f32.mxu1 %vm192_vm2, %v188_v16  ;;  %p621_p2 = scmp.lt.s32.totalorder %s619_s5, %s615_s18 }
  0x10   :  { %399 = vperm.xlu0 %614, %v396_v39  }
  0x11   :  { %p622_p3 = por %p621_p2, %p620_p1 }
  0x12   :  { %562 = vmatmul.mubr.msk.f32.gmra.mxu0 %vm40_vm1, %v34_v9  ;;  %575 = vmatmul.mubr.msk.f32.gmra.mxu1 %vm192_vm2, %v189_v17 }
  0x13   :  { %564 = vmatprep.mubr.msk.f32.mxu0 %vm40_vm1, %v35_v10  ;;  %593 = vmatprep.mubr.msk.f32.mxu1 %vm293_vm3, %v182_v18  ;;  %p623_p4 = pnand %p622_p3, %p616_p0 }
  0x16   :  { %565 = vmatmul.mubr.msk.f32.gmra.mxu0 %vm40_vm1, %v36_v11 }
  0x17   :  { %607 = vmatprep.mubr.msk.f32.mxu0 %vm638_vm4, %v637_v38 }
  0x8b   :  { %v400_v61 = vpop.permute.xlu0 %399 }
  0x8c   :  { %v405_v62 = vrot.slane %v400_v61, %v404_v60 }
  0xca   :  { %v557_v19 = vpop.f32.mrf.mxu0 }
  0xcb   :  { %v175_v33 = vmax.f32 %v557_v19, 0.0 }
  0xcc   :  { %v135_v20 = vpop.f32.mrf.mxu0 }
  0xcd   :  { %v174_v34 = vmax.f32 %v135_v20, 0.0 }
  0xce   :  { %v560_v21 = vpop.f32.mrf.mxu0  ;;  %v573_v41 = vpop.f32.mrf.mxu1 }
  0xcf   :  { %v177_v31 = vmax.f32 %v560_v21, 0.0 }
  0xd0   :  { %v145_v22 = vpop.f32.mrf.mxu0  ;;  %v274_v42 = vpop.f32.mrf.mxu1 }
  0xd1   :  { %v176_v32 = vmax.f32 %v145_v22, 0.0 }
  0xd2   :  { %v563_v23 = vpop.f32.mrf.mxu0  ;;  %v576_v43 = vpop.f32.mrf.mxu1 }
  0xd3   :  { %v179_v29 = vmax.f32 %v563_v23, 0.0 }
  0xd4   :  { %v155_v24 = vpop.f32.mrf.mxu0  ;;  %v284_v44 = vpop.f32.mrf.mxu1 }
  0xd5   :  { %v178_v30 = vmax.f32 %v155_v24, 0.0 }
  0xd6   :  { %v566_v25 = vpop.f32.mrf.mxu0 }
  0xd7   :  { %v181_v26 = vmax.f32 %v566_v25, 0.0 }
  0xd8   :  { %v165_v27 = vpop.f32.mrf.mxu0 }
  0xd9   :  { %v180_v28 = vmax.f32 %v165_v27, 0.0  ;;  %577 = vmatprep.subr.mxu1 %v181_v26 }
  0xda   :  { %578 = vmatpush3.msra.mxu1 %v181_v26 }
  0xdb   :  { %579 = vmatprep.subr.mxu1 %v180_v28 }
  0xdc   :  { %580 = vmatpush3.msra.mxu1 %v180_v28 }
  0xdd   :  { %581 = vmatprep.subr.mxu1 %v179_v29 }
  0xde   :  { %582 = vmatpush3.msra.mxu1 %v179_v29 }
  0xdf   :  { %583 = vmatprep.subr.mxu1 %v178_v30 }
  0xe0   :  { %584 = vmatpush3.msra.mxu1 %v178_v30 }
  0xe1   :  { %585 = vmatprep.subr.mxu1 %v177_v31 }
  0xe2   :  { %586 = vmatpush3.msra.mxu1 %v177_v31 }
  0xe3   :  { %587 = vmatprep.subr.mxu1 %v176_v32 }
  0xe4   :  { %588 = vmatpush3.msra.mxu1 %v176_v32 }
  0xe5   :  { %589 = vmatprep.subr.mxu1 %v175_v33 }
  0xe6   :  { %590 = vmatpush3.msra.mxu1 %v175_v33 }
  0xe7   :  { %591 = vmatprep.subr.mxu1 %v174_v34 }
  0xe8   :  { %592 = vmatpush3.msra.mxu1 %v174_v34 }
  0xe9   :  { %594 = vmatmul.mubr.msk.f32.vlgmr.msra.gmra.mxu1 %vm293_vm3, %v183_v35 }
  0xea   :  { %596 = vmatprep.mubr.msk.f32.mxu1 %vm293_vm3, %v184_v36 }
  0xed   :  { %597 = vmatmul.mubr.msk.f32.gmra.mxu1 %vm293_vm3, %v185_v37 }
 0x1a9   :  { %v595_v45 = vpop.f32.mrf.mxu1 }
 0x1aa   :  { %v378_v50 = vadd.f32 %v595_v45, %v573_v41 }
 0x1ab   :  { %v372_v46 = vpop.f32.mrf.mxu1 }
 0x1ac   :  { %v373_v53 = vadd.f32 %v372_v46, %v274_v42  ;;  %v392_v55 = vmax.f32 %v378_v50, 0.0 }
 0x1ad   :  { %v598_v47 = vpop.f32.mrf.mxu1 }
 0x1ae   :  { %v388_v48 = vadd.f32 %v598_v47, %v576_v43  ;;  %v391_v56 = vmax.f32 %v373_v53, 0.0 }
 0x1af   :  { %v382_v49 = vpop.f32.mrf.mxu1 }
 0x1b0   :  { %v394_v51 = vmax.f32 %v388_v48, 0.0  ;;  %v383_v52 = vadd.f32 %v382_v49, %v284_v44 }
 0x1b2   :  { %v393_v54 = vmax.f32 %v383_v52, 0.0  ;;  %600 = vmatpush3.msra.mxu0 %v394_v51 }
 0x1b3   :  { %601 = vmatprep.subr.mxu0 %v637_v38 }
 0x1b4   :  { %602 = vmatpush3.msra.mxu0 %v393_v54 }
 0x1b5   :  { %603 = vmatprep.subr.mxu0 %v637_v38 }
 0x1b6   :  { %604 = vmatpush3.msra.mxu0 %v392_v55 }
 0x1b7   :  { %605 = vmatprep.subr.mxu0 %v637_v38 }
 0x1b8   :  { %606 = vmatpush3.msra.mxu0 %v391_v56 }
 0x1b9   :  { %608 = vmatmul.mubr.msk.f32.vlgmr.msra.gmra.mxu0 %vm406_vm5, %v395_v57 }
 0x279   :  { %v476_v63 = vpop.f32.mrf.mxu0 }
 0x27a   :  { %v477_v0 = vadd.f32 %v476_v63, %v405_v62 }
 0x27b   :  { %v609_v1 = vpop.f32.mrf.mxu0 }
 0x27c   :  { %481 = vst.msk [vmem:[#allocation3] sm:$0x1] %vm480_vm6, %v477_v0 }
 0x27d   :  { %626 = shalt.err (!%p623_p4)
}
 0x27e   :  { %491 = dma.vmem_to_hbm [thread:$0]  %s489_s17, 16, %s776_s7, [#allocation4]  }
 0x27f   :  { %635 = dma.done.wait [#allocation4], 16  }
 0x280   :  { %636 = vsyncadd [#allocation4], 4294967280 }
 0x281   :  { %495 = vsyncpa [#allocation4], 1 }

</bundles_post_ra>
